<compile_context>
chip_gen: v5e
topology: v5e:2x2
jax: 0.10.0
libtpu: 0.0.40
codegen_flags: <defaults>
</compile_context>

<pallas_src>
import functools

import jax
import jax.numpy as jnp
import numpy as np
from jax import lax
from jax.experimental import pallas as pl
from jax.experimental.pallas import tpu as pltpu


def _round_up(x, m):
    return (x + m - 1) // m * m


def _vmem_capacity_bytes():
    """Best-effort physical VMEM capacity query; conservative (v7x) fallback."""
    try:
        info = pltpu.get_tpu_info()
        for name in ("vmem_capacity_bytes", "vmem_size_bytes", "vmem_bytes"):
            cap = getattr(info, name, None)
            if cap:
                return int(cap)
    except Exception:
        pass
    return 64 * 1024 * 1024


def _vig_decoder_kernel(x_ref, w1_ref, b1_ref, w2_ref, b2_ref, o_ref, acc_ref,
                        *, hw, ts, lw, n_sub, group, ragged):
    """Grid = (batch tiles, spatial chunks).  Spatial axis is the reduction."""
    s = pl.program_id(1)
    last = pl.num_programs(1) - 1

    @pl.when(s == 0)
    def _init():
        acc_ref[...] = jnp.zeros_like(acc_ref)

    def _slice(idx, apply_mask):
        lo = idx * lw                                   # static, 128-aligned
        v = x_ref[:, :, lo:lo + lw].astype(jnp.float32)
        if apply_mask:
            lane = lax.broadcasted_iota(jnp.int32, v.shape, 2)
            v = jnp.where(s * ts + lo + lane < hw, v, 0.0)
        return v

    def _accumulate(apply_mask):
        # Pure-VPU accumulation into the lane-wide (tb, Cin, lw) partial sum.
        # The single cross-lane (XLU) reduce is deferred to the epilogue, keeping
        # the inner loop DMA-bound.  `group` slices share one acc load/store.
        j = 0
        while j < n_sub:
            g = min(group, n_sub - j)
            part = _slice(j, apply_mask)
            for t in range(1, g):
                part = part + _slice(j + t, apply_mask)
            acc_ref[...] += part
            j += g

    if ragged:
        @pl.when(s != last)
        def _bulk():
            _accumulate(False)

        @pl.when(s == last)
        def _tail():
            _accumulate(True)          # mask lanes >= H*W in the ragged last chunk
    else:
        _accumulate(False)

    @pl.when(s == last)
    def _epilogue():
        # Single 128->1 lane reduce per batch tile (AdaptiveAvgPool numerator).
        pooled = jnp.sum(acc_ref[...], axis=-1)                          # (tb, Cin)
        # Conv2d(in->channels,1x1) + BatchNorm2d (inference) + 1/(H*W) pooling
        # scale, all folded into w1_eff / b1_eff in the wrapper.
        h = jnp.dot(pooled, w1_ref[...],
                    preferred_element_type=jnp.float32) + b1_ref[...]
        # Dropout -> identity (eval mode).
        # Conv2d(channels->n_classes,1x1) == h @ W2.T + b2 (W2 pre-transposed).
        y = jnp.dot(h, w2_ref[...],
                    preferred_element_type=jnp.float32) + b2_ref[...]
        o_ref[...] = y.astype(o_ref.dtype)


def vig_decoder_forward(x, params, *, spatial_tile=None):
    """x: (B, Cin, H, W)  ->  (B, n_classes, 1, 1) float32."""
    B, Cin, H, W = x.shape
    w1, b1 = params["w1"], params["b1"]
    gamma, beta = params["gamma"], params["beta"]
    run_mean, run_var = params["run_mean"], params["run_var"]
    w2, b2 = params["w2"], params["b2"]
    Cmid = w1.shape[0]
    n_classes = w2.shape[0]
    eps = 1e-5
    hw = H * W

    # ---- fold BatchNorm (inference) + pooling 1/(H*W) scale into conv1 ----
    bn_scale = gamma / jnp.sqrt(run_var + eps)                             # (Cmid,)
    w1_eff = (w1.T * bn_scale[None, :] * (1.0 / float(hw))).astype(jnp.float32)  # (Cin, Cmid)
    b1_eff = (b1 * bn_scale + (beta - run_mean * bn_scale)
              ).reshape(1, Cmid).astype(jnp.float32)
    w2_t = w2.T.astype(jnp.float32)                                        # (Cmid, n_classes)
    b2_2d = b2.reshape(1, n_classes).astype(jnp.float32)

    # ---- chip-dependent VMEM budgets ----
    vmem_cap = _vmem_capacity_bytes()
    if vmem_cap >= 96 * 1024 * 1024:           # v5e / v6e: 128 MiB physical VMEM
        x_tile_budget = 16 * 1024 * 1024       # single streamed tile target
        vmem_limit = 100 * 1024 * 1024
        hard_cap = 112 * 1024 * 1024
    else:                                       # v7x: 64 MiB per TensorCore
        x_tile_budget = 8 * 1024 * 1024
        vmem_limit = 48 * 1024 * 1024
        hard_cap = 56 * 1024 * 1024

    # ---- batch tiling: >=2 batch tiles when B >= 16 (v7x megacore), bigger
    #      tiles for large B; B <= 8 keeps a single full-batch tile. ----
    if B <= 8:
        tb = B
    else:
        tb = min(64, max(8, (B // 2) // 8 * 8))
    n_b = pl.cdiv(B, tb)

    itemsize = x.dtype.itemsize        # stream x in its original dtype (no cast pass)
    lw_cap = 128

    # resident VMEM: weights/biases + lane-wide accumulator + (double-buffered) output
    resident = 4 * (Cin * Cmid + Cmid * n_classes + Cmid + n_classes)
    resident += 4 * tb * Cin * lw_cap + 2 * 4 * tb * n_classes

    # ---- spatial tile: sized by the byte budget, not a fixed lane cap ----
    bytes_per_lane = tb * Cin * itemsize
    avail = max(1 << 20, (vmem_limit - resident - (2 << 20)) // 2)   # /2: double-buffered
    budget = min(x_tile_budget, avail)
    max_slices = 256                     # bounds the statically-unrolled lane loop
    max_ts = min(max(128, (budget // bytes_per_lane) // 128 * 128), max_slices * 128)
    ts = min(max_ts, _round_up(hw, 128))
    if spatial_tile is not None:
        ts = min(max(128, _round_up(spatial_tile, 128)), _round_up(hw, 128))
    if hw < 128:
        ts = hw                          # full-extent (un-tiled) spatial block
    lw = ts if ts < 128 else 128
    n_sub = ts // lw
    n_s = pl.cdiv(hw, ts)
    ragged = (hw % ts) != 0              # last chunk needs in-kernel lane masking

    tile_bytes = tb * Cin * ts * itemsize
    vmem_limit = int(min(hard_cap, max(vmem_limit, 2 * tile_bytes + resident + (2 << 20))))

    # x: (B,Cin,H,W) -> (B,Cin,H*W) is a free reshape; no padded HBM copy, no cast.
    x_in = x.reshape(B, Cin, hw)

    kernel = functools.partial(_vig_decoder_kernel, hw=hw, ts=ts, lw=lw,
                               n_sub=n_sub, group=8, ragged=ragged)

    # Constant index_map -> fetched once, stays resident across the whole grid.
    def const_spec(shape):
        return pl.BlockSpec(shape, lambda b, s: (0, 0))

    cost = pl.CostEstimate(
        flops=B * Cin * hw + 2 * B * Cin * Cmid + 2 * B * Cmid * n_classes,
        transcendentals=0,
        bytes_accessed=(x_in.size * itemsize
                        + (Cin * Cmid + Cmid * n_classes + Cmid + n_classes) * 4
                        + B * n_classes * 4),
    )

    y = pl.pallas_call(
        kernel,
        out_shape=jax.ShapeDtypeStruct((B, n_classes), jnp.float32),
        grid=(n_b, n_s),
        in_specs=[
            pl.BlockSpec((tb, Cin, ts), lambda b, s: (b, 0, s)),   # x (streamed)
            const_spec((Cin, Cmid)),                               # w1_eff (BN+1/HW folded)
            const_spec((1, Cmid)),                                 # b1_eff
            const_spec((Cmid, n_classes)),                         # w2_t
            const_spec((1, n_classes)),                            # b2
        ],
        out_specs=pl.BlockSpec((tb, n_classes), lambda b, s: (b, 0)),
        scratch_shapes=[pltpu.VMEM((tb, Cin, lw), jnp.float32)],   # lane-wide pooled-sum acc
        compiler_params=pltpu.CompilerParams(
            dimension_semantics=("parallel", "arbitrary"),
            vmem_limit_bytes=vmem_limit,
        ),
        cost_estimate=cost,
    )(x_in, w1_eff, b1_eff, w2_t, b2_2d)

    return y.reshape(B, n_classes, 1, 1)


def init_params(key, in_channels, channels, n_classes):
    ks = jax.random.split(key, 6)
    w1 = jax.random.normal(ks[0], (channels, in_channels), jnp.float32) * 0.1
    b1 = jax.random.normal(ks[1], (channels,), jnp.float32) * 0.1
    gamma = jnp.ones((channels,), jnp.float32)
    beta = jnp.zeros((channels,), jnp.float32)
    run_mean = jax.random.normal(ks[2], (channels,), jnp.float32) * 0.05
    run_var = jnp.abs(jax.random.normal(ks[3], (channels,), jnp.float32)) * 0.5 + 0.5
    w2 = jax.random.normal(ks[4], (n_classes, channels), jnp.float32) * 0.1
    b2 = jax.random.normal(ks[5], (n_classes,), jnp.float32) * 0.1
    return dict(w1=w1, b1=b1, gamma=gamma, beta=beta,
                run_mean=run_mean, run_var=run_var, w2=w2, b2=b2)


def _reference(x, params):
    """Pure-JAX reference (same inference semantics) for a correctness check."""
    eps = 1e-5
    pooled = jnp.mean(x, axis=(2, 3))                                   # (B, Cin)
    h = pooled @ params["w1"].T + params["b1"]
    scale = params["gamma"] / jnp.sqrt(params["run_var"] + eps)
    h = (h - params["run_mean"]) * scale + params["beta"]
    y = h @ params["w2"].T + params["b2"]
    return y[:, :, None, None]


if __name__ == "__main__":
    B, in_channels, H, W = 2, 4, 16, 16
    channels, n_classes = 32, 8

    key = jax.random.PRNGKey(0)
    k_x, k_p = jax.random.split(key)
    x = jax.random.normal(k_x, (B, in_channels, H, W), jnp.float32)
    params = init_params(k_p, in_channels, channels, n_classes)

    y_ref = _reference(x, params)

    # Default byte-budget tiling (single spatial chunk at this small shape).
    y_default = jax.block_until_ready(vig_decoder_forward(x, params))
    assert y_default.shape == (B, n_classes, 1, 1)
    np.testing.assert_allclose(np.asarray(y_default), np.asarray(y_ref),
                               rtol=1e-5, atol=1e-5)

    # Multi-chunk spatial reduction path (HW=256 -> 2 chunks of 128).
    y_multi = jax.block_until_ready(vig_decoder_forward(x, params, spatial_tile=128))
    np.testing.assert_allclose(np.asarray(y_multi), np.asarray(y_ref),
                               rtol=1e-5, atol=1e-5)

    # Ragged spatial tail path (HW=400, chunks of 128 -> last chunk masked in-kernel).
    x_r = jax.random.normal(k_x, (B, in_channels, 20, 20), jnp.float32)
    y_r_ref = _reference(x_r, params)
    y_r = jax.block_until_ready(vig_decoder_forward(x_r, params, spatial_tile=128))
    np.testing.assert_allclose(np.asarray(y_r), np.asarray(y_r_ref),
                               rtol=1e-5, atol=1e-5)

    print("KERNEL_OK")
</pallas_src>

<mosaic_0001>
module attributes {stable_mosaic.version = 11 : i64} {
  func.func @_vig_decoder_kernel(%arg0: i32, %arg1: i32, %arg2: memref<2x4x256xf32, #tpu.memory_space<vmem>>, %arg3: memref<4x32xf32, #tpu.memory_space<vmem>>, %arg4: memref<1x32xf32, #tpu.memory_space<vmem>>, %arg5: memref<32x8xf32, #tpu.memory_space<vmem>>, %arg6: memref<1x8xf32, #tpu.memory_space<vmem>>, %arg7: memref<2x8xf32, #tpu.memory_space<vmem>>, %arg8: memref<2x4x128xf32, #tpu.memory_space<vmem>>) attributes {dimension_semantics = [#tpu.dimension_semantics<parallel>, #tpu.dimension_semantics<arbitrary>], iteration_bounds = array<i64: 1, 1>, scalar_prefetch = 0 : i64, scratch_operands = 1 : i64, tpu.core_type = #tpu.core_type<tc>, window_params = [{transform_indices = @transform_0, window_bounds = array<i64: 2, 4, 256>}, {pipeline_mode = #tpu.pipeline_mode<synchronous>, transform_indices = @transform_1, window_bounds = array<i64: 4, 32>}, {pipeline_mode = #tpu.pipeline_mode<synchronous>, transform_indices = @transform_2, window_bounds = array<i64: 1, 32>}, {pipeline_mode = #tpu.pipeline_mode<synchronous>, transform_indices = @transform_3, window_bounds = array<i64: 32, 8>}, {pipeline_mode = #tpu.pipeline_mode<synchronous>, transform_indices = @transform_4, window_bounds = array<i64: 1, 8>}, {transform_indices = @transform_5, window_bounds = array<i64: 2, 8>}]} {
    %c0_i32 = arith.constant 0 : i32
    %0 = arith.cmpi eq, %arg1, %c0_i32 : i32
    %1 = arith.extui %0 : i1 to i32
    %c0_i32_0 = arith.constant 0 : i32
    %2 = arith.cmpi ne, %1, %c0_i32_0 : i32
    scf.if %2 {
      %cst = arith.constant 0.000000e+00 : f32
      %12 = vector.broadcast %cst : f32 to vector<2x4x128xf32>
      %c0_13 = arith.constant 0 : index
      %c0_14 = arith.constant 0 : index
      %c0_15 = arith.constant 0 : index
      %13 = vector.load %arg8[%c0_13, %c0_14, %c0_15] : memref<2x4x128xf32, #tpu.memory_space<vmem>>, vector<2x4x128xf32>
      tpu.vector_store %arg8[%c0_13, %c0_14, %c0_15], %12 {strides = array<i32>} : memref<2x4x128xf32, #tpu.memory_space<vmem>>, vector<2x4x128xf32>,
    } else {
    }
    %c0 = arith.constant 0 : index
    %c0_1 = arith.constant 0 : index
    %c0_2 = arith.constant 0 : index
    %3 = vector.load %arg2[%c0, %c0_1, %c0_2] : memref<2x4x256xf32, #tpu.memory_space<vmem>>, vector<2x4x128xf32>
    %c0_3 = arith.constant 0 : index
    %c0_4 = arith.constant 0 : index
    %c128 = arith.constant 128 : index
    %4 = vector.load %arg2[%c0_3, %c0_4, %c128] : memref<2x4x256xf32, #tpu.memory_space<vmem>>, vector<2x4x128xf32>
    %5 = arith.addf %3, %4 : vector<2x4x128xf32>
    %c0_5 = arith.constant 0 : index
    %c0_6 = arith.constant 0 : index
    %c0_7 = arith.constant 0 : index
    %6 = vector.load %arg8[%c0_5, %c0_6, %c0_7] : memref<2x4x128xf32, #tpu.memory_space<vmem>>, vector<2x4x128xf32>
    %7 = arith.addf %6, %5 : vector<2x4x128xf32>
    %c0_8 = arith.constant 0 : index
    %c0_9 = arith.constant 0 : index
    %c0_10 = arith.constant 0 : index
    %8 = vector.load %arg8[%c0_8, %c0_9, %c0_10] : memref<2x4x128xf32, #tpu.memory_space<vmem>>, vector<2x4x128xf32>
    tpu.vector_store %arg8[%c0_8, %c0_9, %c0_10], %7 {strides = array<i32>} : memref<2x4x128xf32, #tpu.memory_space<vmem>>, vector<2x4x128xf32>,
    %c0_i32_11 = arith.constant 0 : i32
    %9 = arith.cmpi eq, %arg1, %c0_i32_11 : i32
    %10 = arith.extui %9 : i1 to i32
    %c0_i32_12 = arith.constant 0 : i32
    %11 = arith.cmpi ne, %10, %c0_i32_12 : i32
    scf.if %11 {
      %c0_13 = arith.constant 0 : index
      %c0_14 = arith.constant 0 : index
      %c0_15 = arith.constant 0 : index
      %12 = vector.load %arg8[%c0_13, %c0_14, %c0_15] : memref<2x4x128xf32, #tpu.memory_space<vmem>>, vector<2x4x128xf32>
      %cst = arith.constant dense<0.000000e+00> : vector<2x4xf32>
      %13 = vector.multi_reduction <add>, %12, %cst [2] : vector<2x4x128xf32> to vector<2x4xf32>
      %c0_16 = arith.constant 0 : index
      %c0_17 = arith.constant 0 : index
      %14 = vector.load %arg3[%c0_16, %c0_17] : memref<4x32xf32, #tpu.memory_space<vmem>>, vector<4x32xf32>
      %cst_18 = arith.constant dense<0.000000e+00> : vector<2x32xf32>
      %15 = tpu.matmul %13, %14, %cst_18 {dimension_numbers = #tpu.dot_dimension_numbers<[1], [0], [0], [1], [0, 0, 1, 1], [], []>} : vector<2x4xf32>, vector<4x32xf32>, vector<2x32xf32> -> vector<2x32xf32>
      %c0_19 = arith.constant 0 : index
      %c0_20 = arith.constant 0 : index
      %16 = vector.load %arg4[%c0_19, %c0_20] : memref<1x32xf32, #tpu.memory_space<vmem>>, vector<1x32xf32>
      %17 = vector.broadcast %16 : vector<1x32xf32> to vector<2x32xf32>
      %18 = arith.addf %15, %17 : vector<2x32xf32>
      %c0_21 = arith.constant 0 : index
      %c0_22 = arith.constant 0 : index
      %19 = vector.load %arg5[%c0_21, %c0_22] : memref<32x8xf32, #tpu.memory_space<vmem>>, vector<32x8xf32>
      %cst_23 = arith.constant dense<0.000000e+00> : vector<2x8xf32>
      %20 = tpu.matmul %18, %19, %cst_23 {dimension_numbers = #tpu.dot_dimension_numbers<[1], [0], [0], [1], [0, 0, 1, 1], [], []>} : vector<2x32xf32>, vector<32x8xf32>, vector<2x8xf32> -> vector<2x8xf32>
      %c0_24 = arith.constant 0 : index
      %c0_25 = arith.constant 0 : index
      %21 = vector.load %arg6[%c0_24, %c0_25] : memref<1x8xf32, #tpu.memory_space<vmem>>, vector<1x8xf32>
      %22 = vector.broadcast %21 : vector<1x8xf32> to vector<2x8xf32>
      %23 = arith.addf %20, %22 : vector<2x8xf32>
      %c0_26 = arith.constant 0 : index
      %c0_27 = arith.constant 0 : index
      %24 = vector.load %arg7[%c0_26, %c0_27] : memref<2x8xf32, #tpu.memory_space<vmem>>, vector<2x8xf32>
      tpu.vector_store %arg7[%c0_26, %c0_27], %23 {strides = array<i32>} : memref<2x8xf32, #tpu.memory_space<vmem>>, vector<2x8xf32>,
    } else {
    }
    return
  }
  func.func @transform_0(%arg0: i32, %arg1: i32) -> (i32, i32, i32) {
    %c0_i32 = arith.constant 0 : i32
    %c0_i32_0 = arith.constant 0 : i32
    return %arg0, %c0_i32, %arg1 : i32, i32, i32
  }
  func.func @transform_1(%arg0: i32, %arg1: i32) -> (i32, i32) {
    %c0_i32 = arith.constant 0 : i32
    %c0_i32_0 = arith.constant 0 : i32
    %c0_i32_1 = arith.constant 0 : i32
    return %c0_i32, %c0_i32_0 : i32, i32
  }
  func.func @transform_2(%arg0: i32, %arg1: i32) -> (i32, i32) {
    %c0_i32 = arith.constant 0 : i32
    %c0_i32_0 = arith.constant 0 : i32
    %c0_i32_1 = arith.constant 0 : i32
    return %c0_i32, %c0_i32_0 : i32, i32
  }
  func.func @transform_3(%arg0: i32, %arg1: i32) -> (i32, i32) {
    %c0_i32 = arith.constant 0 : i32
    %c0_i32_0 = arith.constant 0 : i32
    %c0_i32_1 = arith.constant 0 : i32
    return %c0_i32, %c0_i32_0 : i32, i32
  }
  func.func @transform_4(%arg0: i32, %arg1: i32) -> (i32, i32) {
    %c0_i32 = arith.constant 0 : i32
    %c0_i32_0 = arith.constant 0 : i32
    %c0_i32_1 = arith.constant 0 : i32
    return %c0_i32, %c0_i32_0 : i32, i32
  }
  func.func @transform_5(%arg0: i32, %arg1: i32) -> (i32, i32) {
    %c0_i32 = arith.constant 0 : i32
    %c0_i32_0 = arith.constant 0 : i32
    return %arg0, %c0_i32 : i32, i32
  }
}

</mosaic_0001>

<bundles_post_ra>
// kernel: tpu_custom_call.1
= control target key start
LH: loop header
LB: loop body
LE: loop exit
PB: predicated region body
PF: predicated region fallthrough
CT: control target
= control target key end

     0   :  { %v173_v0 = vmov 0.0   ;;  %s241_s0 = inlined_call_operand.vmem [shape: f32[2,4,256], index: 0, kind: input, shape index: {}]   ;;  %s242_s1 = inlined_call_operand.vmem [shape: f32[4,32], index: 1, kind: input, shape index: {}]   ;;  %s243_s2 = inlined_call_operand.vmem [shape: f32[1,32], index: 2, kind: input, shape index: {}]   ;;  %s244_s3 = inlined_call_operand.vmem [shape: f32[32,8], index: 3, kind: input, shape index: {}]   ;;  %s245_s4 = inlined_call_operand.vmem [shape: f32[1,8], index: 4, kind: input, shape index: {}]   ;;  %s246_s5 = inlined_call_operand.hbm [shape: f32[2,8], index: 5, kind: output, shape index: {}]  }
   0x1   :  { %25 = vst [vmem:[#allocation2] sm:$0xf] %v173_v0  ;;  %v27_v1 = vld [vmem:[%s241_s0] sm:$0xf]  ;;  %v29_v2 = vld [vmem:[%s241_s0 + $0x4] sm:$0xf] }
   0x2   :  { %26 = vst [vmem:[#allocation2 + $0x4] sm:$0xf] %v173_v0  ;;  %v28_v3 = vld [vmem:[%s241_s0 + $0x8] sm:$0xf]  ;;  %v30_v4 = vld [vmem:[%s241_s0 + $0xc] sm:$0xf] }
   0x3   :  { %10 = vsyncpa [#allocation4], 0  ;;  %v31_v5 = vadd.f32 %v29_v2, %v27_v1  ;;  %v32_v6 = vadd.f32 %v30_v4, %v28_v3  ;;  %vm44_vm0 = vcmask 1043456   ;;  %v51_v15 = vld [vmem:[%s242_s1] sm:$0xf]  ;;  %v93_v16 = vld [vmem:[%s244_s3 + $0x18] sm:$0xff]  ;;  %v58_v19 = vlaneseq }
   0x4   :  { %140 = vmatpush.msk.msra.mxu0 %vm44_vm0, %v51_v15  ;;  %v92_v17 = vld [vmem:[%s244_s3 + $0x10] sm:$0xff]  ;;  %114 = vmatpush.msra.mxu1 %v93_v16  ;;  %vm62_vm1 = vcmask 1041409   ;;  %vm64_vm2 = vcmask 31744   ;;  %v91_v25 = vld [vmem:[%s244_s3 + $0x8] sm:$0xff]  ;;  %v90_v26 = vld [vmem:[%s244_s3] sm:$0xff]  ;;  %vm98_vm3 = vcmask 261120  }
   0x5   :  { %v59_v20 = vand.u32 127, %v58_v19  ;;  %v145_v27 = vld [vmem:[%s243_s2] ss:$0 sm:$0xff]  ;;  %s174_s13 = smov [#allocation3]   ;;  %s131_s17 = sshll.u32 %s246_s5, 4  ;;  %vm122_vm4 = vcmask 58368   ;;  %s132_s17 = int_to_ptr.hbm [resolvable:$true] %s131_s17 }
   0x6   :  { %115 = vmatpush.msra.mxu1 %v92_v17  ;;  %v146_v30 = vld [vmem:[%s245_s4] ss:$0 sm:$0xff]  ;;  %s129_s14 = sshll.u32 %s174_s13, 4  ;;  %s130_s14 = int_to_ptr.vmem [resolvable:$true] %s129_s14 }
   0x8   :  { %v33_v7 = vld [vmem:[#allocation2] sm:$0xf]  ;;  %116 = vmatpush.msra.mxu1 %v91_v25 }
   0x9   :  { %v35_v8 = vadd.f32 %v33_v7, %v31_v5  ;;  %v34_v9 = vld [vmem:[#allocation2 + $0x4] sm:$0xf] }
   0xa   :  { %v36_v10 = vadd.f32 %v34_v9, %v32_v6  ;;  %117 = vmatpush.msra.mxu1 %v90_v26 }
   0xb   :  { %37 = vst [vmem:[#allocation2] sm:$0xf] %v35_v8 }
   0xc   :  { %38 = vst [vmem:[#allocation2 + $0x4] sm:$0xf] %v36_v10 }
  0x12   :  { %v42_v11 = vld [vmem:[#allocation2] sm:$0xf] }
  0x13   :  { %v45_v12 = vsel %vm44_vm0, %v42_v11, 0.0  ;;  %v43_v13 = vld [vmem:[#allocation2 + $0x4] sm:$0xf] }
  0x14   :  { %46 = vadd.xlane.f32.xlu0 %v45_v12  ;;  %v48_v14 = vsel %vm44_vm0, %v43_v13, 0.0 }
  0x1c   :  { %49 = vadd.xlane.f32.xlu0 %v48_v14 }
  0x87   :  { %v47_v18 = vpop.xlane.xlu0 %46 }
  0x88   :  { %v60_v22 = vperm.slane %v47_v18, %v59_v20 }
  0x8f   :  { %v50_v21 = vpop.xlane.xlu0 %49 }
  0x90   :  { %v61_v23 = vperm.slane %v50_v21, %v59_v20 }
  0x92   :  { %v63_v24 = vsel %vm62_vm1, %v61_v23, %v60_v22 }
  0x93   :  { %141 = vmatmul.msk.f32.vlgmr.msra.gmra.mxu0 %vm64_vm2, %v63_v24 }
 0x110   :  { %v87_v28 = vpop.f32.mrf.mxu0 }
 0x111   :  { %v88_v29 = vadd.f32 %v145_v27, %v87_v28 }
 0x113   :  { %142 = vmatmul.msk.f32.vlgmr.msra.gmra.mxu1 %vm98_vm3, %v88_v29 }
 0x190   :  { %v119_v31 = vpop.f32.mrf.mxu1 }
 0x191   :  { %v120_v32 = vadd.f32 %v146_v30, %v119_v31 }
 0x193   :  { %123 = vst.msk [vmem:[#allocation3] sm:$0x3] %vm122_vm4, %v120_v32 }
 0x194   :  { %134 = dma.vmem_to_hbm [thread:$0]  %s130_s14, 32, %s132_s17, [#allocation4]  }
 0x195   :  { %171 = dma.done.wait [#allocation4], 32  }
 0x196   :  { %172 = vsyncadd [#allocation4], 4294967264 }
 0x197   :  { %139 = vsyncpa [#allocation4], 1 }

</bundles_post_ra>
